<compile_context>
chip_gen: v6e
topology: v6e:2x2x1
jax: 0.10.0
libtpu: 0.0.40
codegen_flags: <defaults>
</compile_context>

<pallas_src>
import jax
import jax.numpy as jnp
from jax.experimental import pallas as pl
from jax.experimental.pallas import tpu as pltpu


def _inv1x1_kernel(w_ref, x_ref, m_ref, z_ref):
    # w_ref: (c, c)   x_ref: (c, Tc)   m_ref: (1, Tc)   z_ref: (c, Tc)
    z = jnp.dot(w_ref[...], x_ref[...], preferred_element_type=jnp.float32)
    # Mask multiply in f32, broadcast over channel rows, then store in z dtype.
    z_ref[...] = (z * m_ref[...].astype(jnp.float32)).astype(z_ref.dtype)


def _expand_weight(weight, channels, n_split):
    """Fold the Flow-TTS channel permutation into a block-structured (c, c) weight.

    z_nct = W_exp @ x_nct  is exactly  permute -> conv1x1(W) -> inverse permute.
    """
    g = channels // n_split
    half = n_split // 2
    ch = jnp.arange(channels)
    a = ch // (g * half)            # which half of the channel axis
    rem = ch % (g * half)
    grp = rem // half               # group index in [0, channels // n_split)
    s = rem % half                  # position inside the half-split
    split_idx = a * half + s        # row/col into the (n_split, n_split) weight
    w_exp = weight[split_idx[:, None], split_idx[None, :]]
    same_group = grp[:, None] == grp[None, :]
    return jnp.where(same_group, w_exp, jnp.zeros((), weight.dtype))


def _choose_t_chunk(c, t, itemsize, batch, target_bytes):
    """Lane-dense time chunk sized for ~target_bytes per x block."""
    if t <= 256:
        return t  # full-extent block: always layout-legal, no tail
    cols = (target_bytes // (itemsize * c)) // 128 * 128
    cols = max(128, min(cols, pl.cdiv(t, 128) * 128))
    # Megacore (v7x): keep at least ~4 total grid steps so both TCs get work.
    while batch * pl.cdiv(t, cols) < 4 and cols > 128:
        cols = max(128, ((cols // 2) // 128) * 128)
    return cols


def invertible_1x1_conv_forward(x, mask, weight, n_split, *,
                                target_block_bytes=2 << 20):
    """x: (b, c, t) [bf16 or f32], mask: (b, 1, t) f32, weight: (n_split, n_split) f32."""
    b, c, t = x.shape
    assert c % n_split == 0 and n_split % 2 == 0

    out_dtype = x.dtype
    # Fold view/permute into a (c, c) weight once; store in activation dtype so
    # the MXU sees a (bf16, bf16) -> f32 matmul when activations are bf16.
    w_exp = _expand_weight(weight, c, n_split).astype(out_dtype)

    itemsize = jnp.dtype(out_dtype).itemsize
    t_chunk = _choose_t_chunk(c, t, itemsize, b, target_block_bytes)
    grid = (b, pl.cdiv(t, t_chunk))  # no host-side pad; Pallas handles ragged tail

    # VMEM budget: double-buffered x/z/mask blocks + resident weight + headroom.
    blk_bytes = (2 * t_chunk * (2 * c * itemsize + jnp.dtype(mask.dtype).itemsize)
                 + 2 * c * c * itemsize)
    vmem_limit = int(min(max(2 * blk_bytes + (1 << 20), 32 << 20), 64 << 20))

    z = pl.pallas_call(
        _inv1x1_kernel,
        out_shape=jax.ShapeDtypeStruct((b, c, t), out_dtype),
        grid_spec=pltpu.PrefetchScalarGridSpec(
            num_scalar_prefetch=0,
            grid=grid,
            in_specs=[
                # (c, c) weight, resident across the whole grid.
                pl.BlockSpec((c, c), lambda i, j: (0, 0)),
                # x block: batch dim squeezed -> kernel sees (c, t_chunk).
                pl.BlockSpec((None, c, t_chunk), lambda i, j: (i, 0, j)),
                # mask block: (1, t_chunk), broadcast over rows inside the kernel.
                pl.BlockSpec((None, 1, t_chunk), lambda i, j: (i, 0, j)),
            ],
            out_specs=pl.BlockSpec((None, c, t_chunk), lambda i, j: (i, 0, j)),
        ),
        compiler_params=pltpu.CompilerParams(
            dimension_semantics=("parallel", "parallel"),
            vmem_limit_bytes=vmem_limit),
    )(w_exp, x, mask)

    # logdet(W) * (c / n_split) * sum(mask) — tiny scalar work, plain JAX.
    # det(W) > 0 by construction, so slogdet == torch.logdet.
    _, logabsdet = jnp.linalg.slogdet(weight)
    logdet = logabsdet * (c / n_split) * jnp.sum(mask)
    return z, logdet


def reference_forward(x, mask, weight, n_split):
    """Pure-JAX reference mirroring the PyTorch forward, for validation."""
    b, c, t = x.shape
    g = c // n_split
    xs = x.reshape(b, 2, g, n_split // 2, t)
    xs = jnp.transpose(xs, (0, 1, 3, 2, 4)).reshape(b, n_split, g, t)
    z = jnp.einsum("oi,bigt->bogt", weight, xs,
                   precision=jax.lax.Precision.HIGHEST)
    z = z.reshape(b, 2, n_split // 2, g, t)
    z = jnp.transpose(z, (0, 1, 3, 2, 4)).reshape(b, c, t) * mask
    x_len = jnp.sum(mask, axis=(1, 2))
    logdet = jnp.sum(jnp.log(jnp.linalg.det(weight)) * (c / n_split) * x_len)
    return z, logdet


def make_weight(key, n_split):
    """Deterministic init mirroring torch: QR of a normal matrix, det forced > 0."""
    w = jax.random.normal(key, (n_split, n_split), dtype=jnp.float32)
    q, _ = jnp.linalg.qr(w)
    det = jnp.linalg.det(q)
    q_flipped = q.at[:, 0].set(-q[:, 0])
    return jnp.where(det < 0, q_flipped, q)


if __name__ == "__main__":
    key = jax.random.PRNGKey(0)
    k_w, k_x1, k_x2 = jax.random.split(key, 3)

    batch, channels, n_split = 2, 8, 4
    weight = make_weight(k_w, n_split)

    # Case 1: tiny t (full-extent time block).
    # Case 2: t not a multiple of the 128-wide chunk -> exercises the ragged
    #         final block (padless path) and the multi-chunk grid.
    cases = ((16, (16, 10), k_x1), (300, (300, 177), k_x2))

    for t, lens, kx in cases:
        x_f32 = jax.random.normal(kx, (batch, channels, t), dtype=jnp.float32)
        x = x_f32.astype(jnp.bfloat16)  # bf16 HBM storage of activations
        lengths = jnp.asarray(lens, dtype=jnp.int32)
        mask = (jnp.arange(t)[None, None, :] <
                lengths[:, None, None]).astype(jnp.float32)

        z, logdet = invertible_1x1_conv_forward(x, mask, weight, n_split)
        z = jax.block_until_ready(z)
        logdet = jax.block_until_ready(logdet)

        # Reference in f32 from the same bf16-cast activations.
        z_ref, logdet_ref = reference_forward(
            x.astype(jnp.float32), mask, weight, n_split)

        assert jnp.allclose(z.astype(jnp.float32), z_ref,
                            atol=5e-2, rtol=5e-2), f"z mismatch (t={t})"
        assert jnp.allclose(logdet, logdet_ref,
                            atol=1e-3, rtol=1e-3), f"logdet mismatch (t={t})"

    print("KERNEL_OK")
</pallas_src>

<mosaic_0001>
module attributes {stable_mosaic.version = 11 : i64} {
  func.func @_inv1x1_kernel(%arg0: i32, %arg1: i32, %arg2: memref<8x8xbf16, #tpu.memory_space<vmem>>, %arg3: memref<1x8x16xbf16, #tpu.memory_space<vmem>>, %arg4: memref<1x1x16xf32, #tpu.memory_space<vmem>>, %arg5: memref<1x8x16xbf16, #tpu.memory_space<vmem>>) attributes {dimension_semantics = [#tpu.dimension_semantics<parallel>, #tpu.dimension_semantics<parallel>], iteration_bounds = array<i64: 2, 1>, scalar_prefetch = 0 : i64, scratch_operands = 0 : i64, tpu.core_type = #tpu.core_type<tc>, window_params = [{pipeline_mode = #tpu.pipeline_mode<synchronous>, transform_indices = @transform_0, window_bounds = array<i64: 8, 8>}, {transform_indices = @transform_1, window_bounds = array<i64: 1, 8, 16>}, {transform_indices = @transform_2, window_bounds = array<i64: 1, 1, 16>}, {transform_indices = @transform_3, window_bounds = array<i64: 1, 8, 16>}]} {
    %c0 = arith.constant 0 : index
    %c0_0 = arith.constant 0 : index
    %0 = vector.load %arg2[%c0, %c0_0] : memref<8x8xbf16, #tpu.memory_space<vmem>>, vector<8x8xbf16>
    %c0_1 = arith.constant 0 : index
    %c0_2 = arith.constant 0 : index
    %c0_3 = arith.constant 0 : index
    %1 = vector.load %arg3[%c0_1, %c0_2, %c0_3] : memref<1x8x16xbf16, #tpu.memory_space<vmem>>, vector<1x8x16xbf16>
    %2 = vector.shape_cast %1 : vector<1x8x16xbf16> to vector<8x16xbf16>
    %cst = arith.constant dense<0.000000e+00> : vector<8x16xf32>
    %3 = tpu.matmul %0, %2, %cst {dimension_numbers = #tpu.dot_dimension_numbers<[1], [0], [0], [1], [0, 0, 1, 1], [], []>} : vector<8x8xbf16>, vector<8x16xbf16>, vector<8x16xf32> -> vector<8x16xf32>
    %c0_4 = arith.constant 0 : index
    %c0_5 = arith.constant 0 : index
    %c0_6 = arith.constant 0 : index
    %4 = vector.load %arg4[%c0_4, %c0_5, %c0_6] : memref<1x1x16xf32, #tpu.memory_space<vmem>>, vector<1x1x16xf32>
    %5 = vector.shape_cast %4 : vector<1x1x16xf32> to vector<1x16xf32>
    %6 = vector.broadcast %5 : vector<1x16xf32> to vector<8x16xf32>
    %7 = arith.mulf %3, %6 : vector<8x16xf32>
    %8 = arith.truncf %7 : vector<8x16xf32> to vector<8x16xbf16>
    %c0_7 = arith.constant 0 : index
    %c0_8 = arith.constant 0 : index
    %c0_9 = arith.constant 0 : index
    %9 = vector.load %arg5[%c0_7, %c0_8, %c0_9] : memref<1x8x16xbf16, #tpu.memory_space<vmem>>, vector<1x8x16xbf16>
    %10 = vector.shape_cast %9 : vector<1x8x16xbf16> to vector<8x16xbf16>
    %11 = vector.shape_cast %8 : vector<8x16xbf16> to vector<1x8x16xbf16>
    tpu.vector_store %arg5[%c0_7, %c0_8, %c0_9], %11 {strides = array<i32>} : memref<1x8x16xbf16, #tpu.memory_space<vmem>>, vector<1x8x16xbf16>,
    return
  }
  func.func @transform_0(%arg0: i32, %arg1: i32) -> (i32, i32) {
    %c0_i32 = arith.constant 0 : i32
    %c0_i32_0 = arith.constant 0 : i32
    %c0_i32_1 = arith.constant 0 : i32
    return %c0_i32, %c0_i32_0 : i32, i32
  }
  func.func @transform_1(%arg0: i32, %arg1: i32) -> (i32, i32, i32) {
    %c0_i32 = arith.constant 0 : i32
    %c0_i32_0 = arith.constant 0 : i32
    return %arg0, %c0_i32, %arg1 : i32, i32, i32
  }
  func.func @transform_2(%arg0: i32, %arg1: i32) -> (i32, i32, i32) {
    %c0_i32 = arith.constant 0 : i32
    %c0_i32_0 = arith.constant 0 : i32
    return %arg0, %c0_i32, %arg1 : i32, i32, i32
  }
  func.func @transform_3(%arg0: i32, %arg1: i32) -> (i32, i32, i32) {
    %c0_i32 = arith.constant 0 : i32
    %c0_i32_0 = arith.constant 0 : i32
    return %arg0, %c0_i32, %arg1 : i32, i32, i32
  }
}

</mosaic_0001>

<bundles_post_ra>
// kernel: tpu_custom_call.1
= control target key start
LH: loop header
LB: loop body
LE: loop exit
PB: predicated region body
PF: predicated region fallthrough
CT: control target
= control target key end

     0   :  { %8 = vsyncpa [#allocation3], 0  ;;  %s865_s0 = inlined_call_operand.hbm [shape: bf16[8,8], index: 0, kind: input, shape index: {}]   ;;  %s866_s1 = inlined_call_operand.hbm [shape: bf16[2,8,16], index: 1, kind: input, shape index: {}]   ;;  %s867_s2 = inlined_call_operand.vmem [shape: f32[2,1,16], index: 2, kind: input, shape index: {}]   ;;  %s868_s3 = inlined_call_operand.hbm [shape: bf16[2,8,16], index: 3, kind: output, shape index: {}]  }
   0x1   :  { %9 = vsyncpa [#allocation6], 0 }
   0x2   :  { %11 = vsyncpa [#allocation6 + $0x1], 0 }
   0x3   :  { %12 = vsyncpa [#allocation4], 0 }
   0x4   :  { %14 = vsyncpa [#allocation4 + $0x1], 0  ;;  %s687_s12 = smov 0   ;;  %s689_s13 = smov 0  }
   0x5   :  { %s691_s14 = smov 0   ;;  %s693_s15 = smov 0  }
   0x6   :  { %s695_s16 = smov 0   ;;  %s697_s17 = smov 0  }
   0x7 LB: > { %s422_s18 = sadd.s32 4294967295, %s660_s17   ;;  %s423_s19 = sadd.s32 4294967294, %s660_s17   ;;  %s660_s17 = sphi %s697_s17, %s20_s17   ;;  %s656_s16 = sphi %s695_s16, %s885_s16   ;;  %s652_s15 = sphi %s693_s15, %s884_s15   ;;  %s648_s14 = sphi %s691_s14, %s883_s14   ;;  %s644_s13 = sphi %s689_s13, %s882_s13   ;;  %s640_s12 = sphi %s687_s12, %s881_s12  }
   0x8   : > { %p75_p0 = scmp.ne.s32.totalorder %s644_s13, %s640_s12  ;;  %p721_p1 = scmp.eq.s32.totalorder %s422_s18, 0 }
   0x9   : > { %p725_p2 = scmp.eq.s32.totalorder %s422_s18, 1  ;;  %p135_p3 = scmp.eq.s32.totalorder %s423_s19, 1 }
   0xa   : > { %p731_p4 = por %p721_p1, %p75_p0  ;;  %p424_p5 = scmp.ge.s32.totalorder %s660_s17, 1 }
   0xb   : > { %p736_p6 = por %p135_p3, %p75_p0  ;;  %p142_p7 = scmp.lt.s32.totalorder %s660_s17, 3 }
   0xc   : > { %s872_s22 = scalar_select %p731_p4, 1, 0 }
   0xd   : > { %s873_s23 = scalar_select %p736_p6, 1, 0 }
   0xe   : > { %p741_p8 = pnand %p424_p5, %p142_p7  ;;  %s662_s25 = smov [#allocation2]  }
   0xf   : > { %s155_s26 = sshll.u32 %s662_s25, 4  ;;  %s32_s28 = sadd.s32 1, %s656_s16  ;;  %s156_s26 = int_to_ptr.vmem [resolvable:$true] %s155_s26 }
  0x10   : > { %p455_p10 = pneg %p741_p8  ;;  %s62_s29 = sadd.s32 1, %s648_s14 }
  0x11   : > { %p34_p12 = scmp.ge.s32.totalorder %s32_s28, 2  ;;  %s533_s30 = scalar_lea.vmem %s156_s26, 64 }
  0x12   : > { %p750_p11 = pnand %p455_p10, %p721_p1  ;;  %p534_p0 = scmp.ne.s32.totalorder %s156_s26, %s533_s30 }
  0x13   : > { %p541_p7 = scmp.lt.s32.totalorder %s156_s26, %s156_s26  ;;  %p542_p6 = scmp.lt.s32.totalorder %s533_s30, %s533_s30 }
  0x14   : > { %p524_p13 = pneg %p750_p11 }
  0x15   : > { %p543_p9 = por %p542_p6, %p541_p7 }
  0x16   : > { %p536_p3 = pnand %p534_p0, %p524_p13 }
  0x18   : > { %p537_p5 = pneg %p536_p3 }
  0x1a   : > { %p544_p4 = pnand %p543_p9, %p537_p5 }
  0x1c   : > { %547 = shalt.err (!%p544_p4)
}
  0x1d   : > { %458 = dma.hbm_to_vmem [thread:$0]  (!%p750_p11), %s865_s0, 64, %s156_s26, [#allocation3]  }
  0x1e   : > { %s887_s28 = smov (%p34_p12, %s32_s28), 0  ;;  %p69_p6 = scmp.ne.s32.totalorder %s648_s14, %s644_s13 }
  0x1f   : > { %p70_p4 = scmp.eq.s32.totalorder %s660_s17, 0  ;;  %s57_s6 = ssub.s32 %s656_s16, %s887_s28 }
  0x20   : > { %p468_p9 = scmp.lt.s32.totalorder %s660_s17, 2  ;;  %p60_p10 = scmp.eq.s32.totalorder %s57_s6, 0 }
  0x21   : > { %p71_p13 = por %p70_p4, %p69_p6  ;;  %p773_p0 = por %p725_p2, %p69_p6 }
  0x22   : > { %s166_s8 = sand.u32 1, %s648_s14   ;;  %s428_s11 = sshll.u32 %s656_s16, 6 }
  0x23   : > { %s779_s9 = scalar_select %p60_p10, %s648_s14, %s62_s29  }
  0x24   : > { %s427_s10 = sshll.u32 %s166_s8, 2  ;;  %s176_s25 = scalar_lea.hbm %s866_s1, %s428_s11 }
  0x25   : > { %s170_s26 = scalar_lea.vmem [#allocation5], %s427_s10  ;;  %p785_p11 = pnand %p468_p9, %p71_p13 }
  0x26   : > { %s178_s27 = sshll.u32 %s170_s26, 4  ;;  %s167_s21 = scalar_lea.sflag [#allocation6], %s166_s8  ;;  %s179_s27 = int_to_ptr.vmem [resolvable:$true] %s178_s27 }
  0x27   : > { %p550_p2 = pneg %p785_p11  ;;  %s561_s4 = scalar_lea.vmem %s179_s27, 64 }
  0x28   : > { %p562_p12 = scmp.ne.s32.totalorder %s179_s27, %s561_s4  ;;  %s663_s29 = smov [#allocation5]  }
  0x29   : > { %s566_s5 = sshll.u32 %s663_s29, 4  ;;  %s567_s5 = int_to_ptr.vmem [resolvable:$false] %s566_s5 }
  0x2a   : > { %p564_p3 = pnand %p562_p12, %p550_p2  ;;  %s568_s6 = scalar_lea.vmem %s567_s5, 128 }
  0x2b   : > { %p569_p7 = scmp.lt.s32.totalorder %s179_s27, %s567_s5  ;;  %p570_p6 = scmp.lt.s32.totalorder %s568_s6, %s561_s4 }
  0x2c   : > { %p565_p5 = pneg %p564_p3 }
  0x2d   : > { %p571_p4 = por %p570_p6, %p569_p7 }
  0x2f   : > { %p572_p10 = pnand %p571_p4, %p565_p5 }
  0x31   : > { %575 = shalt.err (!%p572_p10)
}
  0x32   : > { %462 = dma.hbm_to_vmem [thread:$0]  (!%p785_p11), %s176_s25, 64, %s179_s27, %s167_s21  }
  0x33   : > { %196 = sbr.rel (%p741_p8) target bundleno = 277 (0x115), region = 32 }
  0x38   : > { %627 = dma.done.wait (%p721_p1), [#allocation3], 64  }
  0x39   : > { %629 = vsyncadd (%p721_p1), [#allocation3], 4294967232  ;;  %s800_s8 = sand.u32 1, %s644_s13   ;;  %p878_p9 = scmp.ne.s32.totalorder %s872_s22, 0 }
  0x3a   : > { %s431_s10 = sshll.u32 %s800_s8, 2  ;;  %s203_s11 = scalar_lea.sflag [#allocation6], %s800_s8 }
  0x3b   : > { %s206_s18 = scalar_lea.vmem [#allocation5], %s431_s10 }
  0x3c   : > { %631 = dma.done.wait (%p878_p9), %s203_s11, 64  }
  0x3d   : > { %633 = vsyncadd (%p878_p9), %s203_s11, 4294967232  ;;  %v664_v0 = vmov 0.0   ;;  %vm665_vm0 = vmmov 0   ;;  %vm248_vm1 = vcmask 1043456   ;;  %v243_v1 = vld [vmem:[%s206_s18] sm:$0xf] }
  0x3e   : > { %441 = vmatprep.subr.bf16.mxu0 %v664_v0  ;;  %443 = vmatprep.mubr.msk.bf16.mxu0 %vm665_vm0, %v664_v0  ;;  %v250_v2 = vsel %vm248_vm1, %v243_v1, 0  ;;  %v242_v3 = vld [vmem:[#allocation2] sm:$0xf]  ;;  %vm244_vm2 = vcmask 64512   ;;  %p235_p1 = scmp.lt.s32.totalorder %s652_s15, 1  ;;  %s436_s25 = sshll.u32 %s652_s15, 6 }
  0x3f   : > { %442 = vmatpush3.bf16.msra.mxu0 %v250_v2  ;;  %s234_s26 = scalar_lea.vmem [#allocation7], %s431_s10  ;;  %vm301_vm3 = vcmask 125952   ;;  %s817_s4 = scalar_lea.hbm %s868_s3, %s436_s25 }
  0x40   : > { %s236_s20 = scalar_select %p235_p1, %s652_s15, 1 }
  0x41   : > { %s318_s27 = sshll.u32 %s234_s26, 4  ;;  %s304_s15 = scalar_lea.sflag [#allocation4], %s800_s8  ;;  %s819_s27 = int_to_ptr.vmem [resolvable:$true] %s318_s27 }
  0x42   : > { %444 = vmatmul.mubr.msk.bf16.vlgmr.msra.gmra.mxu0 %vm244_vm2, %v242_v3  ;;  %s240_s22 = scalar_lea.vmem %s867_s2, %s236_s20  ;;  %s576_s29 = scalar_lea.vmem %s819_s27, 64 }
  0x43   : > { %v434_v4 = vld [vmem:[%s240_s22] ss:$0 sm:$0xff]  ;;  %p577_p8 = scmp.ne.s32.totalorder %s819_s27, %s576_s29  ;;  %s666_s5 = smov [#allocation7]  }
  0x44   : > { %s580_s6 = sshll.u32 %s666_s5, 4  ;;  %s581_s6 = int_to_ptr.vmem [resolvable:$false] %s580_s6 }
  0x45   : > { %p578_p13 = pnand %p577_p8, %p773_p0  ;;  %s582_s10 = scalar_lea.vmem %s581_s6, 128 }
  0x46   : > { %p583_p2 = scmp.lt.s32.totalorder %s819_s27, %s581_s6  ;;  %p584_p12 = scmp.lt.s32.totalorder %s582_s10, %s576_s29 }
  0x47   : > { %p579_p11 = pneg %p578_p13 }
  0x48   : > { %p585_p3 = por %p584_p12, %p583_p2 }
  0x4a   : > { %p586_p5 = pnand %p585_p3, %p579_p11 }
 0x102   : > { %v286_v5 = vpop.f32.mrf.mxu0 }
 0x103   : > { %v299_v6 = vmul.f32 %v434_v4, %v286_v5 }
 0x104   : > { %v445_v7 = vpop.f32.mrf.mxu0 }
 0x105   : > { %v300_v8 = vpack.c.bf16 %v299_v6, %v299_v6 }
 0x106   : > { %v289_v9 = vpop.f32.mrf.mxu0 }
 0x107   : > { %302 = vst.msk [vmem:[%s234_s26] sm:$0xf] %vm301_vm3, %v300_v8 }
 0x108   : > { %v446_v10 = vpop.f32.mrf.mxu0 }
 0x109   : > { %589 = shalt.err (!%p586_p5)
}
 0x10a   : > { %s590_s11 = scalar_lea.hbm %s817_s4, 64  ;;  %s594_s20 = scalar_lea.hbm %s868_s3, 128 }
 0x10b   : > { %p591_p7 = scmp.ne.s32.totalorder %s817_s4, %s590_s11  ;;  %p595_p10 = scmp.lt.s32.totalorder %s817_s4, %s868_s3 }
 0x10c   : > { %p596_p9 = scmp.lt.s32.totalorder %s594_s20, %s590_s11 }
 0x10d   : > { %p592_p6 = pnand %p591_p7, %p773_p0 }
 0x10e   : > { %p597_p1 = por %p596_p9, %p595_p10 }
 0x10f   : > { %p593_p4 = pneg %p592_p6 }
 0x111   : > { %p598_p8 = pnand %p597_p1, %p593_p4 }
 0x113   : > { %601 = shalt.err (!%p598_p8)
}
 0x114   : > { %453 = dma.vmem_to_hbm [thread:$0]  (%p773_p0), %s819_s27, 64, %s817_s4, %s304_s15  }
 0x115 PF: > { %s330_s22 = sand.u32 1, %s640_s12   ;;  %p879_p13 = scmp.ne.s32.totalorder %s873_s23, 0 }
 0x116   : > { %p880_p11 = scmp.ge.s32.totalorder %s660_s17, 2  ;;  %s331_s25 = scalar_lea.sflag [#allocation4], %s330_s22 }
 0x118   : > { %p464_p2 = pnand %p880_p11, %p879_p13 }
 0x11a   : > { %p465_p12 = pneg %p464_p2 }
 0x11c   : > { %635 = dma.done.wait (%p465_p12), %s331_s25, 64  }
 0x11d   : > { %637 = vsyncadd (%p465_p12), %s331_s25, 4294967232  ;;  %s20_s17 = sadd.s32 1, %s660_s17   ;;  %s881_s12 = smov %s644_s13 }
 0x11e   : > { %p17_p3 = scmp.ge.s32.totalorder %s20_s17, 4   ;;  %s882_s13 = smov %s648_s14 }
 0x11f   : > { %s883_s14 = smov %s779_s9  ;;  %s884_s15 = smov %s656_s16 }
 0x120   : > { %s885_s16 = smov %s887_s28  ;;  %19 = sbr.rel (!%p17_p3) target bundleno = 7 (0x7), region = 85 }
 0x125   :  { %336 = vsyncpa [#allocation3], 1 }
 0x126   :  { %338 = vsyncpa [#allocation3 + $0x1], 1 }
 0x127   :  { %339 = vsyncpa [#allocation6], 1 }
 0x128   :  { %341 = vsyncpa [#allocation6 + $0x1], 1 }
 0x129   :  { %342 = vsyncpa [#allocation4], 1 }
 0x12a   :  { %344 = vsyncpa [#allocation4 + $0x1], 1 }

</bundles_post_ra>
